<compile_context>
chip_gen: v5e
topology: v5e:2x2
jax: 0.10.0
libtpu: 0.0.40
codegen_flags: <defaults>
</compile_context>

<pallas_src>
import jax
import jax.numpy as jnp
from jax.experimental import pallas as pl
from jax.experimental.pallas import tpu as pltpu

_LOG_EPSILON = -18.4207

_LANE = 512       # lane-dense last dim (multiple of 128)
_TILE_ROWS = 512  # 512 x 512 f32 = 1 MiB per stream per buffer


# ---------------------------------------------------------------------------
# Pallas kernel: the elementwise hot path  res = y + p * (x - y)
# ---------------------------------------------------------------------------
def _skip_blend_kernel(p_ref, x_ref, y_ref, o_ref):
    # p_ref: scalar gate in SMEM (f32).  x/y/o: (TR, LANE) VMEM tiles.
    p = p_ref[0]
    x = x_ref[...]
    y = y_ref[...]
    # y + p*(x - y) == p*x + (1-p)*y ; computed in promoted precision, stored
    # back in the output dtype (keeps bf16 end-to-end if inputs are bf16).
    o_ref[...] = (y + p * (x - y)).astype(o_ref.dtype)


def skip_connection_blend(skip_prob, x, y):
    """Apply res = skip_prob * x + (1 - skip_prob) * y with a Pallas kernel."""
    assert x.shape == y.shape and x.dtype == y.dtype
    orig_shape = x.shape
    total = x.size
    itemsize = jnp.dtype(x.dtype).itemsize

    # Lane-dense flatten: (rows, 512).  Pad the tail so total == rows * 512.
    rows = pl.cdiv(total, _LANE)
    pad = rows * _LANE - total
    xf = x.reshape(-1)
    yf = y.reshape(-1)
    if pad:
        xf = jnp.pad(xf, (0, pad))
        yf = jnp.pad(yf, (0, pad))
    x2 = xf.reshape(rows, _LANE)
    y2 = yf.reshape(rows, _LANE)

    # Row tile: full extent when small (allowed even if not a multiple of 8),
    # otherwise 512 rows (divisible by 8; last grid block may be partial).
    tr = rows if rows <= _TILE_ROWS else _TILE_ROWS
    grid = (pl.cdiv(rows, tr),)

    p = jnp.asarray(skip_prob, jnp.float32).reshape((1,))

    out2 = pl.pallas_call(
        _skip_blend_kernel,
        out_shape=jax.ShapeDtypeStruct((rows, _LANE), x.dtype),
        grid=grid,
        in_specs=[
            pl.BlockSpec(memory_space=pltpu.SMEM),           # scalar gate
            pl.BlockSpec((tr, _LANE), lambda i: (i, 0)),      # x tile
            pl.BlockSpec((tr, _LANE), lambda i: (i, 0)),      # y tile
        ],
        out_specs=pl.BlockSpec((tr, _LANE), lambda i: (i, 0)),
        compiler_params=pltpu.CompilerParams(
            dimension_semantics=("parallel",)),
        cost_estimate=pl.CostEstimate(
            flops=2 * total,
            transcendentals=0,
            bytes_accessed=3 * total * itemsize),
    )(p, x2, y2)

    out_flat = out2.reshape(-1)
    if pad:
        out_flat = out_flat[:total]
    return out_flat.reshape(orig_shape)


# ---------------------------------------------------------------------------
# Glue: RelaxedBernoulli rsample (scalar) — matches torch.distributions
#   clamp logits at _LOG_EPSILON, add logistic noise, divide by temperature,
#   sigmoid.
# ---------------------------------------------------------------------------
def relaxed_bernoulli_rsample(key, logit, temperature):
    logit = jnp.maximum(jnp.asarray(logit, jnp.float32), _LOG_EPSILON)
    eps = jnp.finfo(jnp.float32).eps
    u = jax.random.uniform(key, (), dtype=jnp.float32)
    u = jnp.clip(u, eps, 1.0 - eps)                     # torch clamp_probs
    logistic_noise = jnp.log(u) - jnp.log1p(-u)
    return jax.nn.sigmoid((logit + logistic_noise) / temperature)


def skip_connection_forward(key, var_logit, temperature, x, y):
    skip_prob = relaxed_bernoulli_rsample(key, var_logit, temperature)
    return skip_prob, skip_connection_blend(skip_prob, x, y)


if __name__ == "__main__":
    key = jax.random.PRNGKey(0)
    k_in, k_out, k_sample = jax.random.split(key, 3)

    # Deterministic "parameters" from the module's __init__:
    #   prior_prob = 0.5 -> var_logit = log(0.5) - log(0.5) = 0.0
    #   temperature = 1.0
    var_logit = jnp.float32(0.0)
    temperature = jnp.float32(1.0)

    N, C, H, W = 2, 4, 16, 16
    x = jax.random.normal(k_in, (N, C, H, W), dtype=jnp.float32)   # "input"
    y = jax.random.normal(k_out, (N, C, H, W), dtype=jnp.float32)  # "output"

    skip_prob, res = skip_connection_forward(k_sample, var_logit, temperature, x, y)
    res = jax.block_until_ready(res)

    # Reference check (pure JAX, f32)
    ref = skip_prob * x + (1.0 - skip_prob) * y
    assert res.shape == x.shape and res.dtype == x.dtype
    assert jnp.allclose(res, ref, atol=1e-6), "mismatch vs f32 reference"

    # bf16 end-to-end path (dtype preserved, HBM traffic halved)
    xb = x.astype(jnp.bfloat16)
    yb = y.astype(jnp.bfloat16)
    res_b = jax.block_until_ready(skip_connection_blend(skip_prob, xb, yb))
    ref_b = (yb.astype(jnp.float32)
             + skip_prob * (xb.astype(jnp.float32) - yb.astype(jnp.float32)))
    assert res_b.dtype == jnp.bfloat16
    assert jnp.allclose(res_b.astype(jnp.float32), ref_b, atol=2e-2), \
        "mismatch vs bf16 reference"

    print("KERNEL_OK")
</pallas_src>

<mosaic_0001>
module attributes {stable_mosaic.version = 11 : i64} {
  func.func @_skip_blend_kernel(%arg0: i32, %arg1: memref<1xf32, #tpu.memory_space<smem>>, %arg2: memref<4x512xf32, #tpu.memory_space<vmem>>, %arg3: memref<4x512xf32, #tpu.memory_space<vmem>>, %arg4: memref<4x512xf32, #tpu.memory_space<vmem>>) attributes {dimension_semantics = [#tpu.dimension_semantics<parallel>], iteration_bounds = array<i64: 1>, scalar_prefetch = 0 : i64, scratch_operands = 0 : i64, tpu.core_type = #tpu.core_type<tc>, window_params = [{transform_indices = @transform_0, window_bounds = array<i64: 1>}, {transform_indices = @transform_1, window_bounds = array<i64: 4, 512>}, {transform_indices = @transform_2, window_bounds = array<i64: 4, 512>}, {transform_indices = @transform_3, window_bounds = array<i64: 4, 512>}]} {
    %c0 = arith.constant 0 : index
    %0 = memref.load %arg1[%c0] : memref<1xf32, #tpu.memory_space<smem>>
    %c0_0 = arith.constant 0 : index
    %c0_1 = arith.constant 0 : index
    %1 = vector.load %arg2[%c0_0, %c0_1] : memref<4x512xf32, #tpu.memory_space<vmem>>, vector<4x512xf32>
    %c0_2 = arith.constant 0 : index
    %c0_3 = arith.constant 0 : index
    %2 = vector.load %arg3[%c0_2, %c0_3] : memref<4x512xf32, #tpu.memory_space<vmem>>, vector<4x512xf32>
    %3 = arith.subf %1, %2 : vector<4x512xf32>
    %4 = vector.broadcast %0 : f32 to vector<4x512xf32>
    %5 = arith.mulf %4, %3 : vector<4x512xf32>
    %6 = arith.addf %2, %5 : vector<4x512xf32>
    %c0_4 = arith.constant 0 : index
    %c0_5 = arith.constant 0 : index
    %7 = vector.load %arg4[%c0_4, %c0_5] : memref<4x512xf32, #tpu.memory_space<vmem>>, vector<4x512xf32>
    tpu.vector_store %arg4[%c0_4, %c0_5], %6 {strides = array<i32>} : memref<4x512xf32, #tpu.memory_space<vmem>>, vector<4x512xf32>,
    return
  }
  func.func @transform_0(%arg0: i32) -> i32 {
    %c0_i32 = arith.constant 0 : i32
    %c0_i32_0 = arith.constant 0 : i32
    return %c0_i32 : i32
  }
  func.func @transform_1(%arg0: i32) -> (i32, i32) {
    %c0_i32 = arith.constant 0 : i32
    %c0_i32_0 = arith.constant 0 : i32
    return %arg0, %c0_i32 : i32, i32
  }
  func.func @transform_2(%arg0: i32) -> (i32, i32) {
    %c0_i32 = arith.constant 0 : i32
    %c0_i32_0 = arith.constant 0 : i32
    return %arg0, %c0_i32 : i32, i32
  }
  func.func @transform_3(%arg0: i32) -> (i32, i32) {
    %c0_i32 = arith.constant 0 : i32
    %c0_i32_0 = arith.constant 0 : i32
    return %arg0, %c0_i32 : i32, i32
  }
}

</mosaic_0001>

<bundles_post_ra>
// kernel: tpu_custom_call.1
= control target key start
LH: loop header
LB: loop body
LE: loop exit
PB: predicated region body
PF: predicated region fallthrough
CT: control target
= control target key end

     0   :  { %9 = vsyncpa [#allocation4], 0  ;;  %s192_s0 = inlined_call_operand.<no memory space> [shape: f32[1], index: 0, kind: input, shape index: {}]   ;;  %s193_s1 = inlined_call_operand.hbm [shape: f32[4,512], index: 1, kind: input, shape index: {}]   ;;  %s194_s2 = inlined_call_operand.hbm [shape: f32[4,512], index: 2, kind: input, shape index: {}]   ;;  %s195_s3 = inlined_call_operand.hbm [shape: f32[4,512], index: 3, kind: output, shape index: {}]  }
   0x1   :  { %10 = vsyncpa [#allocation7], 0 }
   0x2   :  { %11 = vsyncpa [#allocation5], 0  ;;  %s19_s14 = sshll.u32 %s193_s1, 4  ;;  %s157_s15 = smov [#allocation3]   ;;  %s20_s14 = int_to_ptr.hbm [resolvable:$true] %s19_s14 }
   0x3   :  { %s21_s16 = sshll.u32 %s157_s15, 4  ;;  %s30_s19 = sshll.u32 %s194_s2, 4  ;;  %s22_s16 = int_to_ptr.vmem [resolvable:$true] %s21_s16  ;;  %s31_s19 = int_to_ptr.hbm [resolvable:$true] %s30_s19 }
   0x4   :  { %24 = dma.hbm_to_vmem [thread:$0]  %s20_s14, 256, %s22_s16, [#allocation4]  }
   0x5   :  { %s158_s20 = smov [#allocation6]  }
   0x6   :  { %s32_s21 = sshll.u32 %s158_s20, 4  ;;  %s33_s21 = int_to_ptr.vmem [resolvable:$true] %s32_s21 }
   0x7   :  { %35 = dma.hbm_to_vmem [thread:$0]  %s31_s19, 256, %s33_s21, [#allocation7]  }
   0x8   :  { %151 = dma.done.wait [#allocation4], 256  }
   0x9   :  { %152 = vsyncadd [#allocation4], 4294967040 }
   0xa   :  { %153 = dma.done.wait [#allocation7], 256  }
   0xb   :  { %154 = vsyncadd [#allocation7], 4294967040  ;;  %v45_v0 = vld [vmem:[#allocation3] sm:$0xff]  ;;  %v47_v1 = vld [vmem:[#allocation6] sm:$0xff]  ;;  %v51_v2 = vstv %s192_s0  ;;  %s159_s2 = smov [#allocation8]   ;;  %s65_s26 = sshll.u32 %s195_s3, 4  ;;  %s66_s26 = int_to_ptr.hbm [resolvable:$true] %s65_s26 }
   0xc   :  { %v46_v3 = vld [vmem:[#allocation3 + $0x8] sm:$0xff]  ;;  %v49_v4 = vsub.f32 %v45_v0, %v47_v1  ;;  %v48_v5 = vld [vmem:[#allocation6 + $0x8] sm:$0xff]  ;;  %s63_s23 = sshll.u32 %s159_s2, 4  ;;  %s64_s23 = int_to_ptr.vmem [resolvable:$true] %s63_s23 }
   0xd   :  { %v50_v6 = vsub.f32 %v46_v3, %v48_v5 }
   0xe   :  { %v52_v7 = vmul.f32 %v51_v2, %v49_v4 }
   0xf   :  { %v53_v8 = vmul.f32 %v51_v2, %v50_v6 }
  0x10   :  { %v54_v9 = vadd.f32 %v52_v7, %v47_v1 }
  0x11   :  { %v55_v10 = vadd.f32 %v53_v8, %v48_v5 }
  0x12   :  { %56 = vst [vmem:[#allocation8] sm:$0xff] %v54_v9 }
  0x13   :  { %57 = vst [vmem:[#allocation8 + $0x8] sm:$0xff] %v55_v10 }
  0x14   :  { %68 = dma.vmem_to_hbm [thread:$0]  %s64_s23, 256, %s66_s26, [#allocation5]  }
  0x15   :  { %155 = dma.done.wait [#allocation5], 256  }
  0x16   :  { %156 = vsyncadd [#allocation5], 4294967040 }
  0x17   :  { %73 = vsyncpa [#allocation4], 1 }
  0x18   :  { %74 = vsyncpa [#allocation7], 1 }
  0x19   :  { %75 = vsyncpa [#allocation5], 1 }

</bundles_post_ra>
